<compile_context>
chip_gen: v7x
topology: tpu7x:2x2x1
jax: 0.10.0
libtpu: 0.0.40
codegen_flags: <defaults>
</compile_context>

<pallas_src>
import jax
import jax.numpy as jnp
from jax.experimental import pallas as pl
from jax.experimental.pallas import tpu as pltpu

BN_EPS = 1e-5
LANE = 128


def _round_up(n, m):
    return ((n + m - 1) // m) * m


def _mlp_kernel(x_ref, w1, b1, w2, b2, w3, b3, w4, b4, o_ref):
    # x arrives f32; cast to bf16 on the VPU right before the MXU (cheap, hidden
    # under the matmuls) instead of a separate XLA cast pass in HBM.
    h = x_ref[...].astype(jnp.bfloat16)

    def layer(h, w_r, b_r):
        # Linear (weights pre-transposed to (in, out), bf16 on the MXU, f32
        # accumulation) + ReLU.  Eval-mode BN and Dropout(0.3) were folded into
        # the next layer's weights/bias in the wrapper.
        z = jnp.dot(h, w_r[...], preferred_element_type=jnp.float32) + b_r[...]
        return jnp.maximum(z, 0.0).astype(jnp.bfloat16)

    h = layer(h, w1, b1)
    h = layer(h, w2, b2)
    h = layer(h, w3, b3)
    # Final Linear (no activation); bf16 lane-dense store (dominant HBM stream).
    o_ref[...] = (
        jnp.dot(h, w4[...], preferred_element_type=jnp.float32) + b4[...]
    ).astype(o_ref.dtype)


def missing_value_classifier_forward(x, params, tile_b=2048):
    """x: (batch, 2*input_dim) float32.  params: dict of PyTorch-layout tensors."""
    batch, in_dim = x.shape
    out_dim = params["w4"].shape[0]

    h_dims = [params[f"w{li}"].shape[0] for li in (1, 2, 3)]
    h_pad = [_round_up(d, LANE) for d in h_dims]
    out_pad = _round_up(out_dim, LANE)

    # ---- Fold eval-mode BatchNorm into the NEXT layer (all in f32) ----------
    #   a_i  = ReLU(W_i h + b_i)
    #   bn_i = a_i * s_i + t_i,  s_i = g_i * rsqrt(v_i + eps),  t_i = be_i - m_i * s_i
    #   W_{i+1} bn_i + b_{i+1} = (W_{i+1} * s_i) a_i + (W_{i+1} @ t_i + b_{i+1})
    ws_f32, bs_f32 = [], []
    s_prev = t_prev = None
    for li in (1, 2, 3):
        W = params[f"w{li}"].astype(jnp.float32)
        b = params[f"b{li}"].astype(jnp.float32)
        if s_prev is not None:
            b = b + W @ t_prev          # original W for the shift term
            W = W * s_prev[None, :]     # scale along the input axis
        ws_f32.append(W)
        bs_f32.append(b)
        s_prev = params[f"g{li}"] * jax.lax.rsqrt(params[f"v{li}"] + BN_EPS)
        t_prev = params[f"be{li}"] - params[f"m{li}"] * s_prev
    W4 = params["w4"].astype(jnp.float32)
    b4 = params["b4"].astype(jnp.float32) + W4 @ t_prev
    W4 = W4 * s_prev[None, :]
    ws_f32.append(W4)
    bs_f32.append(b4)

    # ---- Pad to lane-dense widths, transpose to (in, out), cast to bf16 -----
    out_dims_pad = h_pad + [out_pad]
    in_dims_pad = [in_dim] + h_pad      # input feature dim deliberately unpadded
    lin_w, lin_b = [], []
    for W, b, dp_in, dp_out in zip(ws_f32, bs_f32, in_dims_pad, out_dims_pad):
        d_out, d_in = W.shape
        Wp = jnp.pad(W, ((0, dp_out - d_out), (0, dp_in - d_in)))
        lin_w.append(Wp.T.astype(jnp.bfloat16))                      # (in_pad, out_pad)
        lin_b.append(
            jnp.pad(b, (0, dp_out - d_out)).reshape(1, -1).astype(jnp.float32)
        )

    # ---- Batch tiling (no padding of x; Pallas handles the ragged tail) -----
    tile_b = min(tile_b, _round_up(batch, 8))
    # v7x megacore: keep >= 2 "parallel" grid steps when the batch allows it.
    tile_b = max(8, min(tile_b, _round_up(pl.cdiv(batch, 2), 8)))
    grid = (pl.cdiv(batch, tile_b),)

    args = [
        x,
        lin_w[0], lin_b[0],
        lin_w[1], lin_b[1],
        lin_w[2], lin_b[2],
        lin_w[3], lin_b[3],
    ]

    def const_spec(a):
        # Constant block index -> Pallas revisits the same block every step and
        # does not re-DMA it; weights/biases stay VMEM-resident across the grid.
        return pl.BlockSpec(a.shape, lambda i: (0, 0))

    in_specs = [pl.BlockSpec((tile_b, in_dim), lambda i: (i, 0))]
    in_specs += [const_spec(a) for a in args[1:]]
    out_specs = pl.BlockSpec((tile_b, out_pad), lambda i: (i, 0))

    n_rows = grid[0] * tile_b
    flops = 2 * n_rows * (
        in_dim * h_pad[0] + h_pad[0] * h_pad[1] + h_pad[1] * h_pad[2] + h_pad[2] * out_pad
    )
    param_bytes = sum(int(a.size) * a.dtype.itemsize for a in args[1:])
    bytes_accessed = int(x.size) * 4 + n_rows * out_pad * 2 + param_bytes

    out_padded = pl.pallas_call(
        _mlp_kernel,
        out_shape=jax.ShapeDtypeStruct((batch, out_pad), jnp.bfloat16),
        grid=grid,
        in_specs=in_specs,
        out_specs=out_specs,
        compiler_params=pltpu.CompilerParams(
            dimension_semantics=("parallel",),          # megacore sharding on v7x
            vmem_limit_bytes=48 * 1024 * 1024,
        ),
        cost_estimate=pl.CostEstimate(
            flops=int(flops), transcendentals=0, bytes_accessed=int(bytes_accessed)
        ),
    )(*args)
    # Slice off the lane padding, upcast the tiny (batch, 15) slab back to f32.
    return out_padded[:batch, :out_dim].astype(jnp.float32)


def init_params(key, input_dim, output_dim=15, hidden_dims=(256, 128, 64)):
    """Deterministic synthetic parameters matching the PyTorch module's shapes."""
    aug = input_dim * 2
    dims = [aug] + list(hidden_dims)
    params = {}
    keys = jax.random.split(key, 4 * len(hidden_dims) + 2)
    ki = 0
    for li, (din, dout) in enumerate(zip(dims[:-1], dims[1:]), start=1):
        scale = 1.0 / jnp.sqrt(jnp.float32(din))
        params[f"w{li}"] = jax.random.uniform(
            keys[ki], (dout, din), jnp.float32, -scale, scale); ki += 1
        params[f"b{li}"] = jax.random.uniform(
            keys[ki], (dout,), jnp.float32, -scale, scale); ki += 1
        params[f"g{li}"] = 1.0 + 0.1 * jax.random.normal(keys[ki], (dout,), jnp.float32); ki += 1
        params[f"be{li}"] = 0.1 * jax.random.normal(keys[ki], (dout,), jnp.float32); ki += 1
        params[f"m{li}"] = 0.05 * jnp.arange(dout, dtype=jnp.float32) / dout
        params[f"v{li}"] = 1.0 + 0.1 * (jnp.arange(dout, dtype=jnp.float32) / dout)
    din, dout = dims[-1], output_dim
    scale = 1.0 / jnp.sqrt(jnp.float32(din))
    params["w4"] = jax.random.uniform(keys[ki], (dout, din), jnp.float32, -scale, scale); ki += 1
    params["b4"] = jax.random.uniform(keys[ki], (dout,), jnp.float32, -scale, scale); ki += 1
    return params


def reference_forward(x, params):
    """Pure-JAX f32 reference for correctness checking."""
    h = x
    for li in (1, 2, 3):
        h = h @ params[f"w{li}"].T + params[f"b{li}"]
        h = jnp.maximum(h, 0.0)
        h = (h - params[f"m{li}"]) / jnp.sqrt(params[f"v{li}"] + BN_EPS)
        h = h * params[f"g{li}"] + params[f"be{li}"]
    return h @ params["w4"].T + params["b4"]


if __name__ == "__main__":
    key = jax.random.PRNGKey(0)
    k_param, k_x, k_x2 = jax.random.split(key, 3)

    input_dim = 16          # original feature dim; forward sees 2*input_dim
    params = init_params(k_param, input_dim, output_dim=15, hidden_dims=(256, 128, 64))

    # Small deterministic test (single grid step).
    batch = 8
    x = jax.random.normal(k_x, (batch, 2 * input_dim), jnp.float32)
    out = jax.block_until_ready(missing_value_classifier_forward(x, params))
    ref = reference_forward(x, params)
    assert out.shape == (batch, 15), out.shape
    # bf16 matmul inputs + bf16 output store -> loosened tolerance vs f32 reference.
    assert jnp.allclose(out, ref, atol=5e-2, rtol=5e-2), float(jnp.max(jnp.abs(out - ref)))

    # Default-tile test: exercises the v7x >=2-step cap and a ragged last block.
    batch2 = 200
    x2 = jax.random.normal(k_x2, (batch2, 2 * input_dim), jnp.float32)
    out2 = jax.block_until_ready(missing_value_classifier_forward(x2, params))
    ref2 = reference_forward(x2, params)
    assert out2.shape == (batch2, 15), out2.shape
    assert jnp.allclose(out2, ref2, atol=5e-2, rtol=5e-2), float(jnp.max(jnp.abs(out2 - ref2)))

    # Explicit small tile: multi-step grid with an unpadded ragged final block.
    out3 = jax.block_until_ready(missing_value_classifier_forward(x2, params, tile_b=64))
    assert out3.shape == (batch2, 15), out3.shape
    assert jnp.allclose(out3, ref2, atol=5e-2, rtol=5e-2), float(jnp.max(jnp.abs(out3 - ref2)))

    print("KERNEL_OK")
</pallas_src>

<mosaic_0001>
module attributes {stable_mosaic.version = 11 : i64} {
  func.func @_mlp_kernel(%arg0: i32, %arg1: memref<8x32xf32, #tpu.memory_space<vmem>>, %arg2: memref<32x256xbf16, #tpu.memory_space<vmem>>, %arg3: memref<1x256xf32, #tpu.memory_space<vmem>>, %arg4: memref<256x128xbf16, #tpu.memory_space<vmem>>, %arg5: memref<1x128xf32, #tpu.memory_space<vmem>>, %arg6: memref<128x128xbf16, #tpu.memory_space<vmem>>, %arg7: memref<1x128xf32, #tpu.memory_space<vmem>>, %arg8: memref<128x128xbf16, #tpu.memory_space<vmem>>, %arg9: memref<1x128xf32, #tpu.memory_space<vmem>>, %arg10: memref<8x128xbf16, #tpu.memory_space<vmem>>) attributes {dimension_semantics = [#tpu.dimension_semantics<parallel>], iteration_bounds = array<i64: 1>, scalar_prefetch = 0 : i64, scratch_operands = 0 : i64, tpu.core_type = #tpu.core_type<tc>, window_params = [{transform_indices = @transform_0, window_bounds = array<i64: 8, 32>}, {pipeline_mode = #tpu.pipeline_mode<synchronous>, transform_indices = @transform_1, window_bounds = array<i64: 32, 256>}, {pipeline_mode = #tpu.pipeline_mode<synchronous>, transform_indices = @transform_2, window_bounds = array<i64: 1, 256>}, {pipeline_mode = #tpu.pipeline_mode<synchronous>, transform_indices = @transform_3, window_bounds = array<i64: 256, 128>}, {pipeline_mode = #tpu.pipeline_mode<synchronous>, transform_indices = @transform_4, window_bounds = array<i64: 1, 128>}, {pipeline_mode = #tpu.pipeline_mode<synchronous>, transform_indices = @transform_5, window_bounds = array<i64: 128, 128>}, {pipeline_mode = #tpu.pipeline_mode<synchronous>, transform_indices = @transform_6, window_bounds = array<i64: 1, 128>}, {pipeline_mode = #tpu.pipeline_mode<synchronous>, transform_indices = @transform_7, window_bounds = array<i64: 128, 128>}, {pipeline_mode = #tpu.pipeline_mode<synchronous>, transform_indices = @transform_8, window_bounds = array<i64: 1, 128>}, {transform_indices = @transform_9, window_bounds = array<i64: 8, 128>}]} {
    %c0 = arith.constant 0 : index
    %c0_0 = arith.constant 0 : index
    %0 = vector.load %arg1[%c0, %c0_0] : memref<8x32xf32, #tpu.memory_space<vmem>>, vector<8x32xf32>
    %1 = arith.truncf %0 : vector<8x32xf32> to vector<8x32xbf16>
    %c0_1 = arith.constant 0 : index
    %c0_2 = arith.constant 0 : index
    %2 = vector.load %arg2[%c0_1, %c0_2] : memref<32x256xbf16, #tpu.memory_space<vmem>>, vector<32x256xbf16>
    %cst = arith.constant dense<0.000000e+00> : vector<8x256xf32>
    %3 = tpu.matmul %1, %2, %cst {dimension_numbers = #tpu.dot_dimension_numbers<[1], [0], [0], [1], [0, 0, 1, 1], [], []>} : vector<8x32xbf16>, vector<32x256xbf16>, vector<8x256xf32> -> vector<8x256xf32>
    %c0_3 = arith.constant 0 : index
    %c0_4 = arith.constant 0 : index
    %4 = vector.load %arg3[%c0_3, %c0_4] : memref<1x256xf32, #tpu.memory_space<vmem>>, vector<1x256xf32>
    %5 = vector.broadcast %4 : vector<1x256xf32> to vector<8x256xf32>
    %6 = arith.addf %3, %5 : vector<8x256xf32>
    %cst_5 = arith.constant 0.000000e+00 : f32
    %7 = vector.broadcast %cst_5 : f32 to vector<8x256xf32>
    %8 = arith.maximumf %6, %7 : vector<8x256xf32>
    %9 = arith.truncf %8 : vector<8x256xf32> to vector<8x256xbf16>
    %c0_6 = arith.constant 0 : index
    %c0_7 = arith.constant 0 : index
    %10 = vector.load %arg4[%c0_6, %c0_7] : memref<256x128xbf16, #tpu.memory_space<vmem>>, vector<256x128xbf16>
    %cst_8 = arith.constant dense<0.000000e+00> : vector<8x128xf32>
    %11 = tpu.matmul %9, %10, %cst_8 {dimension_numbers = #tpu.dot_dimension_numbers<[1], [0], [0], [1], [0, 0, 1, 1], [], []>} : vector<8x256xbf16>, vector<256x128xbf16>, vector<8x128xf32> -> vector<8x128xf32>
    %c0_9 = arith.constant 0 : index
    %c0_10 = arith.constant 0 : index
    %12 = vector.load %arg5[%c0_9, %c0_10] : memref<1x128xf32, #tpu.memory_space<vmem>>, vector<1x128xf32>
    %13 = vector.broadcast %12 : vector<1x128xf32> to vector<8x128xf32>
    %14 = arith.addf %11, %13 : vector<8x128xf32>
    %cst_11 = arith.constant 0.000000e+00 : f32
    %15 = vector.broadcast %cst_11 : f32 to vector<8x128xf32>
    %16 = arith.maximumf %14, %15 : vector<8x128xf32>
    %17 = arith.truncf %16 : vector<8x128xf32> to vector<8x128xbf16>
    %c0_12 = arith.constant 0 : index
    %c0_13 = arith.constant 0 : index
    %18 = vector.load %arg6[%c0_12, %c0_13] : memref<128x128xbf16, #tpu.memory_space<vmem>>, vector<128x128xbf16>
    %cst_14 = arith.constant dense<0.000000e+00> : vector<8x128xf32>
    %19 = tpu.matmul %17, %18, %cst_14 {dimension_numbers = #tpu.dot_dimension_numbers<[1], [0], [0], [1], [0, 0, 1, 1], [], []>} : vector<8x128xbf16>, vector<128x128xbf16>, vector<8x128xf32> -> vector<8x128xf32>
    %c0_15 = arith.constant 0 : index
    %c0_16 = arith.constant 0 : index
    %20 = vector.load %arg7[%c0_15, %c0_16] : memref<1x128xf32, #tpu.memory_space<vmem>>, vector<1x128xf32>
    %21 = vector.broadcast %20 : vector<1x128xf32> to vector<8x128xf32>
    %22 = arith.addf %19, %21 : vector<8x128xf32>
    %cst_17 = arith.constant 0.000000e+00 : f32
    %23 = vector.broadcast %cst_17 : f32 to vector<8x128xf32>
    %24 = arith.maximumf %22, %23 : vector<8x128xf32>
    %25 = arith.truncf %24 : vector<8x128xf32> to vector<8x128xbf16>
    %c0_18 = arith.constant 0 : index
    %c0_19 = arith.constant 0 : index
    %26 = vector.load %arg8[%c0_18, %c0_19] : memref<128x128xbf16, #tpu.memory_space<vmem>>, vector<128x128xbf16>
    %cst_20 = arith.constant dense<0.000000e+00> : vector<8x128xf32>
    %27 = tpu.matmul %25, %26, %cst_20 {dimension_numbers = #tpu.dot_dimension_numbers<[1], [0], [0], [1], [0, 0, 1, 1], [], []>} : vector<8x128xbf16>, vector<128x128xbf16>, vector<8x128xf32> -> vector<8x128xf32>
    %c0_21 = arith.constant 0 : index
    %c0_22 = arith.constant 0 : index
    %28 = vector.load %arg9[%c0_21, %c0_22] : memref<1x128xf32, #tpu.memory_space<vmem>>, vector<1x128xf32>
    %29 = vector.broadcast %28 : vector<1x128xf32> to vector<8x128xf32>
    %30 = arith.addf %27, %29 : vector<8x128xf32>
    %31 = arith.truncf %30 : vector<8x128xf32> to vector<8x128xbf16>
    %c0_23 = arith.constant 0 : index
    %c0_24 = arith.constant 0 : index
    %32 = vector.load %arg10[%c0_23, %c0_24] : memref<8x128xbf16, #tpu.memory_space<vmem>>, vector<8x128xbf16>
    tpu.vector_store %arg10[%c0_23, %c0_24], %31 {strides = array<i32>} : memref<8x128xbf16, #tpu.memory_space<vmem>>, vector<8x128xbf16>,
    return
  }
  func.func @transform_0(%arg0: i32) -> (i32, i32) {
    %c0_i32 = arith.constant 0 : i32
    %c0_i32_0 = arith.constant 0 : i32
    return %arg0, %c0_i32 : i32, i32
  }
  func.func @transform_1(%arg0: i32) -> (i32, i32) {
    %c0_i32 = arith.constant 0 : i32
    %c0_i32_0 = arith.constant 0 : i32
    %c0_i32_1 = arith.constant 0 : i32
    return %c0_i32, %c0_i32_0 : i32, i32
  }
  func.func @transform_2(%arg0: i32) -> (i32, i32) {
    %c0_i32 = arith.constant 0 : i32
    %c0_i32_0 = arith.constant 0 : i32
    %c0_i32_1 = arith.constant 0 : i32
    return %c0_i32, %c0_i32_0 : i32, i32
  }
  func.func @transform_3(%arg0: i32) -> (i32, i32) {
    %c0_i32 = arith.constant 0 : i32
    %c0_i32_0 = arith.constant 0 : i32
    %c0_i32_1 = arith.constant 0 : i32
    return %c0_i32, %c0_i32_0 : i32, i32
  }
  func.func @transform_4(%arg0: i32) -> (i32, i32) {
    %c0_i32 = arith.constant 0 : i32
    %c0_i32_0 = arith.constant 0 : i32
    %c0_i32_1 = arith.constant 0 : i32
    return %c0_i32, %c0_i32_0 : i32, i32
  }
  func.func @transform_5(%arg0: i32) -> (i32, i32) {
    %c0_i32 = arith.constant 0 : i32
    %c0_i32_0 = arith.constant 0 : i32
    %c0_i32_1 = arith.constant 0 : i32
    return %c0_i32, %c0_i32_0 : i32, i32
  }
  func.func @transform_6(%arg0: i32) -> (i32, i32) {
    %c0_i32 = arith.constant 0 : i32
    %c0_i32_0 = arith.constant 0 : i32
    %c0_i32_1 = arith.constant 0 : i32
    return %c0_i32, %c0_i32_0 : i32, i32
  }
  func.func @transform_7(%arg0: i32) -> (i32, i32) {
    %c0_i32 = arith.constant 0 : i32
    %c0_i32_0 = arith.constant 0 : i32
    %c0_i32_1 = arith.constant 0 : i32
    return %c0_i32, %c0_i32_0 : i32, i32
  }
  func.func @transform_8(%arg0: i32) -> (i32, i32) {
    %c0_i32 = arith.constant 0 : i32
    %c0_i32_0 = arith.constant 0 : i32
    %c0_i32_1 = arith.constant 0 : i32
    return %c0_i32, %c0_i32_0 : i32, i32
  }
  func.func @transform_9(%arg0: i32) -> (i32, i32) {
    %c0_i32 = arith.constant 0 : i32
    %c0_i32_0 = arith.constant 0 : i32
    return %arg0, %c0_i32 : i32, i32
  }
}

</mosaic_0001>

<bundles_post_ra>
// kernel: tpu_custom_call.1
= control target key start
LH: loop header
LB: loop body
LE: loop exit
PB: predicated region body
PF: predicated region fallthrough
CT: control target
= control target key end

     0   :  { %14 = vsyncpa [#allocation3], 0  ;;  %s1092_s0 = inlined_call_operand.hbm [shape: f32[8,32], index: 0, kind: input, shape index: {}]   ;;  %s1093_s1 = inlined_call_operand.hbm [shape: bf16[32,256], index: 1, kind: input, shape index: {}]   ;;  %s1094_s2 = inlined_call_operand.vmem [shape: f32[1,256], index: 2, kind: input, shape index: {}]   ;;  %s1095_s3 = inlined_call_operand.hbm [shape: bf16[256,128], index: 3, kind: input, shape index: {}]   ;;  %s1096_s4 = inlined_call_operand.vmem [shape: f32[1,128], index: 4, kind: input, shape index: {}]   ;;  %s1097_s5 = inlined_call_operand.hbm [shape: bf16[128,128], index: 5, kind: input, shape index: {}]   ;;  %s1098_s6 = inlined_call_operand.vmem [shape: f32[1,128], index: 6, kind: input, shape index: {}]   ;;  %s1099_s7 = inlined_call_operand.hbm [shape: bf16[128,128], index: 7, kind: input, shape index: {}]   ;;  %s1100_s8 = inlined_call_operand.vmem [shape: f32[1,128], index: 8, kind: input, shape index: {}]   ;;  %s1101_s9 = inlined_call_operand.hbm [shape: bf16[8,128], index: 9, kind: output, shape index: {}]  }
   0x1   :  { %15 = vsyncpa [#allocation6], 0 }
   0x2   :  { %16 = vsyncpa [#allocation9], 0 }
   0x3   :  { %17 = vsyncpa [#allocation4], 0  ;;  %s918_s30 = smov [#allocation5]   ;;  %s778_s13 = scalar_lea.hbm %s1093_s1, 512 }
   0x4   :  { %s33_s10 = sshll.u32 %s918_s30, 4  ;;  %p779_p0 = scmp.ne.s32.totalorder %s1093_s1, %s778_s13  ;;  %s34_s10 = int_to_ptr.vmem [resolvable:$true] %s33_s10 }
   0x5   :  { %p782_p1 = scmp.lt.u32.totalorder %s778_s13, %s1093_s1 }
   0x7   :  { %p784_p2 = pnand %p782_p1, %p779_p0 }
   0x9   :  { %787 = shalt.err (!%p784_p2)
}
   0xa   :  { %s788_s18 = scalar_lea.vmem %s34_s10, 512  ;;  %p793_p4 = scmp.lt.s32.totalorder %s34_s10, %s34_s10 }
   0xb   :  { %p789_p3 = scmp.ne.s32.totalorder %s34_s10, %s788_s18  ;;  %p794_p5 = scmp.lt.s32.totalorder %s788_s18, %s788_s18 }
   0xd   :  { %p795_p6 = por %p794_p5, %p793_p4 }
   0xf   :  { %p796_p7 = pnand %p795_p6, %p789_p3 }
  0x11   :  { %799 = shalt.err (!%p796_p7)
}
  0x12   :  { %s919_s19 = smov 128   ;;  %s920_s20 = smov 8  }
  0x13   :  { %39 = dma.hbm_to_vmem [thread:$0]  %s1093_s1, 512, %s34_s10, [#allocation6], %s919_s19, %s919_s19, %s920_s20  }
  0x14   :  { %s921_s23 = smov [#allocation8]   ;;  %s922_s25 = smov [#allocation2]  }
  0x15   :  { %s61_s24 = sshll.u32 %s921_s23, 4  ;;  %s24_s26 = sshll.u32 %s922_s25, 4  ;;  %s62_s24 = int_to_ptr.vmem [resolvable:$true] %s61_s24  ;;  %s25_s26 = int_to_ptr.vmem [resolvable:$true] %s24_s26 }
  0x16   :  { %s800_s29 = scalar_lea.hbm %s1097_s5, 1024 }
  0x17   :  { %p801_p8 = scmp.ne.s32.totalorder %s1097_s5, %s800_s29  ;;  %p804_p9 = scmp.lt.u32.totalorder %s800_s29, %s1097_s5 }
  0x19   :  { %p806_p10 = pnand %p804_p9, %p801_p8 }
  0x1b   :  { %809 = shalt.err (!%p806_p10)
}
  0x1c   :  { %s810_s1 = scalar_lea.vmem %s62_s24, 1024  ;;  %p815_p12 = scmp.lt.s32.totalorder %s62_s24, %s62_s24 }
  0x1d   :  { %p811_p11 = scmp.ne.s32.totalorder %s62_s24, %s810_s1  ;;  %p816_p13 = scmp.lt.s32.totalorder %s810_s1, %s810_s1 }
  0x1f   :  { %p817_p0 = por %p816_p13, %p815_p12 }
  0x21   :  { %p818_p1 = pnand %p817_p0, %p811_p11 }
  0x23   :  { %821 = shalt.err (!%p818_p1)
}
  0x24   :  { %s923_s10 = smov 64   ;;  %s924_s14 = smov 4  }
  0x25   :  { %67 = dma.hbm_to_vmem [thread:$0]  %s1097_s5, 1024, %s62_s24, [#allocation9], %s923_s10, %s923_s10, %s924_s14  }
  0x26   :  { %s822_s19 = scalar_lea.hbm %s1092_s0, 128 }
  0x27   :  { %p823_p2 = scmp.ne.s32.totalorder %s1092_s0, %s822_s19  ;;  %p826_p3 = scmp.lt.u32.totalorder %s822_s19, %s1092_s0 }
  0x29   :  { %p828_p4 = pnand %p826_p3, %p823_p2 }
  0x2b   :  { %831 = shalt.err (!%p828_p4)
}
  0x2c   :  { %s832_s25 = scalar_lea.vmem %s25_s26, 128  ;;  %p837_p6 = scmp.lt.s32.totalorder %s25_s26, %s25_s26 }
  0x2d   :  { %p833_p5 = scmp.ne.s32.totalorder %s25_s26, %s832_s25  ;;  %p838_p7 = scmp.lt.s32.totalorder %s832_s25, %s832_s25 }
  0x2f   :  { %p839_p8 = por %p838_p7, %p837_p6 }
  0x31   :  { %p840_p9 = pnand %p839_p8, %p833_p5 }
  0x33   :  { %843 = shalt.err (!%p840_p9)
}
  0x34   :  { %27 = dma.hbm_to_vmem [thread:$0]  %s1092_s0, 128, %s25_s26, [#allocation3]  }
  0x35   :  { %s925_s27 = smov [#allocation7]   ;;  %s926_s29 = smov [#allocation10]  }
  0x36   :  { %s47_s28 = sshll.u32 %s925_s27, 4  ;;  %s75_s30 = sshll.u32 %s926_s29, 4  ;;  %s48_s28 = int_to_ptr.vmem [resolvable:$true] %s47_s28  ;;  %s76_s30 = int_to_ptr.vmem [resolvable:$true] %s75_s30 }
  0x37   :  { %s844_s13 = scalar_lea.hbm %s1095_s3, 2048 }
  0x38   :  { %p845_p10 = scmp.ne.s32.totalorder %s1095_s3, %s844_s13  ;;  %p848_p11 = scmp.lt.u32.totalorder %s844_s13, %s1095_s3 }
  0x3a   :  { %p850_p12 = pnand %p848_p11, %p845_p10 }
  0x3c   :  { %853 = shalt.err (!%p850_p12)
}
  0x3d   :  { %s854_s0 = scalar_lea.vmem %s48_s28, 2048  ;;  %p859_p0 = scmp.lt.s32.totalorder %s48_s28, %s48_s28 }
  0x3e   :  { %p855_p13 = scmp.ne.s32.totalorder %s48_s28, %s854_s0  ;;  %p860_p1 = scmp.lt.s32.totalorder %s854_s0, %s854_s0 }
  0x40   :  { %p861_p2 = por %p860_p1, %p859_p0 }
  0x42   :  { %p862_p3 = pnand %p861_p2, %p855_p13 }
  0x44   :  { %865 = shalt.err (!%p862_p3)
}
  0x45   :  { %53 = dma.hbm_to_vmem [thread:$0]  %s1095_s3, 2048, %s48_s28, [#allocation6], %s923_s10, %s923_s10, %s924_s14  }
  0x46   :  { %s866_s21 = scalar_lea.hbm %s1099_s7, 1024 }
  0x47   :  { %p867_p4 = scmp.ne.s32.totalorder %s1099_s7, %s866_s21  ;;  %p870_p5 = scmp.lt.u32.totalorder %s866_s21, %s1099_s7 }
  0x49   :  { %p872_p6 = pnand %p870_p5, %p867_p4 }
  0x4b   :  { %875 = shalt.err (!%p872_p6)
}
  0x4c   :  { %s876_s24 = scalar_lea.vmem %s76_s30, 1024  ;;  %p881_p8 = scmp.lt.s32.totalorder %s76_s30, %s76_s30 }
  0x4d   :  { %p877_p7 = scmp.ne.s32.totalorder %s76_s30, %s876_s24  ;;  %p882_p9 = scmp.lt.s32.totalorder %s876_s24, %s876_s24 }
  0x4f   :  { %p883_p10 = por %p882_p9, %p881_p8 }
  0x51   :  { %p884_p11 = pnand %p883_p10, %p877_p7 }
  0x53   :  { %887 = shalt.err (!%p884_p11)
}
  0x54   :  { %81 = dma.hbm_to_vmem [thread:$0]  %s1099_s7, 1024, %s76_s30, [#allocation9], %s923_s10, %s923_s10, %s924_s14  }
  0x55   :  { %910 = dma.done.wait [#allocation3], 128  }
  0x56   :  { %911 = vsyncadd [#allocation3], 4294967168 }
  0x57   :  { %912 = dma.done.wait [#allocation6], 2560  }
  0x58   :  { %913 = vsyncadd [#allocation6], 4294964736 }
  0x59   :  { %914 = dma.done.wait [#allocation9], 2048  }
  0x5a   :  { %915 = vsyncadd [#allocation9], 4294965248  ;;  %v927_v0 = vmov 0   ;;  %v740_v1 = vld [vmem:[#allocation5 + $0x4] ss:$8 sps:$4 sm:$0xff]   ;;  %v100_v5 = vld [vmem:[#allocation2] sm:$0xff]  ;;  %v108_v30 = vlaneseq }
  0x5b   :  { %174 = vmatprep.mubr.bf16.mxu0 %v927_v0  ;;  %v742_v2 = vld [vmem:[#allocation5] ss:$8 sps:$4 sm:$0xff]   ;;  %142 = vmatprep.subr.bf16.mxu0 %v740_v1  ;;  %v743_v3 = vld [vmem:[#allocation5 + $0x14] ss:$8 sps:$4 sm:$0xff]   ;;  %v745_v4 = vld [vmem:[#allocation5 + $0x10] ss:$8 sps:$4 sm:$0xff]   ;;  %v101_v9 = vpack.c.bf16 %v100_v5, %v100_v5 }
  0x5c   :  { %143 = vmatpush1.bf16.msra.mxu0 %v742_v2  ;;  %v746_v6 = vld [vmem:[#allocation7 + $0x40] sm:$0xff]   ;;  %v748_v8 = vld [vmem:[#allocation7 + $0x48] sm:$0xff]   ;;  %vm138_vm0 = vcmask 261120   ;;  %v750_v11 = vld [vmem:[#allocation7 + $0x50] sm:$0xff]   ;;  %v928_v24 = vmov 0.0   ;;  %v109_v31 = vshrl.u32 %v108_v30, 7 }
  0x5d   :  { %144 = vmatprep.subr.bf16.mxu0 %v743_v3  ;;  %v747_v7 = vld [vmem:[#allocation7] sm:$0xff]   ;;  %647 = vmatprep.subr.bf16.mxu1 %v746_v6  ;;  %v749_v10 = vld [vmem:[#allocation7 + $0x8] sm:$0xff]   ;;  %v751_v12 = vld [vmem:[#allocation7 + $0x10] sm:$0xff]   ;;  %vm929_vm1 = vmmov 0   ;;  %s930_s11 = smov [#allocation11]  }
  0x5e   :  { %648 = vmatpush3.bf16.msra.mxu1 %v747_v7  ;;  %v752_v13 = vld [vmem:[#allocation7 + $0x58] sm:$0xff]   ;;  %v754_v15 = vld [vmem:[#allocation7 + $0x60] sm:$0xff]   ;;  %v756_v17 = vld [vmem:[#allocation7 + $0x68] sm:$0xff]   ;;  %v110_v32 = vsub.s32 0, %v109_v31  ;;  %v114_v34 = vsub.s32 1, %v109_v31  ;;  %s596_s12 = sshll.u32 %s930_s11, 4  ;;  %s597_s12 = int_to_ptr.vmem [resolvable:$true] %s596_s12 }
  0x5f   :  { %649 = vmatprep.subr.bf16.mxu1 %v748_v8  ;;  %v753_v14 = vld [vmem:[#allocation7 + $0x18] sm:$0xff]   ;;  %v755_v16 = vld [vmem:[#allocation7 + $0x20] sm:$0xff]   ;;  %v757_v18 = vld [vmem:[#allocation7 + $0x28] sm:$0xff]   ;;  %p893_p13 = scmp.lt.s32.totalorder %s597_s12, %s597_s12 }
  0x60   :  { %145 = vmatpush1.bf16.msra.mxu0 %v745_v4  ;;  %v758_v19 = vld [vmem:[#allocation7 + $0x70] sm:$0xff]   ;;  %v760_v21 = vld [vmem:[#allocation7 + $0x78] sm:$0xff]   ;;  %v762_v23 = vld [vmem:[#allocation8] sm:$0xff]  }
  0x61   :  { %v759_v20 = vld [vmem:[#allocation7 + $0x30] sm:$0xff]   ;;  %v761_v22 = vld [vmem:[#allocation7 + $0x38] sm:$0xff]   ;;  %687 = vmatprep.subr.bf16.mxu0 %v928_v24  ;;  %v763_v25 = vld [vmem:[#allocation8 + $0x8] sm:$0xff]  }
  0x62   :  { %650 = vmatpush3.bf16.msra.mxu1 %v749_v10  ;;  %v764_v26 = vld [vmem:[#allocation8 + $0x10] sm:$0xff]   ;;  %v765_v27 = vld [vmem:[#allocation8 + $0x18] sm:$0xff]   ;;  %v766_v28 = vld [vmem:[#allocation8 + $0x20] sm:$0xff]  }
  0x63   :  { %611 = vmatmul.mubr.msk.bf16.vlgmr.msra.gmra.mrb[0].mxu0 %vm138_vm0, %v101_v9  ;;  %651 = vmatprep.subr.bf16.mxu1 %v750_v11  ;;  %v767_v29 = vld [vmem:[#allocation8 + $0x28] sm:$0xff]   ;;  %v106_v33 = vld [vmem:[%s1094_s2] sm:$0x3]  ;;  %v768_v47 = vld [vmem:[#allocation8 + $0x30] sm:$0xff]  }
  0x64   :  { %688 = vmatpush3.bf16.msra.mxu0 %v762_v23  ;;  %v111_v35 = vrot.slane %v106_v33, %v110_v32  ;;  %v115_v36 = vrot.slane %v106_v33, %v114_v34  ;;  %v769_v48 = vld [vmem:[#allocation8 + $0x38] sm:$0xff]   ;;  %703 = vmatprep.mubr.msk.bf16.mxu0 %vm929_vm1, %v928_v24  ;;  %v770_v49 = vld [vmem:[#allocation10] sm:$0xff]   ;;  %v771_v50 = vld [vmem:[#allocation10 + $0x8] sm:$0xff]  }
  0x65   :  { %689 = vmatprep.subr.bf16.mxu0 %v928_v24  ;;  %v772_v51 = vld [vmem:[#allocation10 + $0x10] sm:$0xff]   ;;  %v773_v52 = vld [vmem:[#allocation10 + $0x18] sm:$0xff]   ;;  %v774_v53 = vld [vmem:[#allocation10 + $0x20] sm:$0xff]  }
  0x66   :  { %652 = vmatpush3.bf16.msra.mxu1 %v751_v12  ;;  %v775_v54 = vld [vmem:[#allocation10 + $0x28] sm:$0xff]   ;;  %v612_v56 = vld [vmem:[%s1096_s4] ss:$0 sm:$0xff]  ;;  %v776_v0 = vld [vmem:[#allocation10 + $0x30] sm:$0xff]  }
  0x67   :  { %653 = vmatprep.subr.bf16.mxu1 %v752_v13  ;;  %v777_v1 = vld [vmem:[#allocation10 + $0x38] sm:$0xff]  }
  0x68   :  { %690 = vmatpush3.bf16.msra.mxu0 %v763_v25  ;;  %v629_v2 = vld [vmem:[%s1098_s6] ss:$0 sm:$0xff]  ;;  %s888_s6 = scalar_lea.vmem %s597_s12, 64 }
  0x69   :  { %691 = vmatprep.subr.bf16.mxu0 %v928_v24  ;;  %v638_v10 = vld [vmem:[%s1100_s8] ss:$0 sm:$0xff]  ;;  %p889_p12 = scmp.ne.s32.totalorder %s597_s12, %s888_s6  ;;  %p894_p0 = scmp.lt.s32.totalorder %s888_s6, %s888_s6 }
  0x6a   :  { %654 = vmatpush3.bf16.msra.mxu1 %v753_v14 }
  0x6b   :  { %655 = vmatprep.subr.bf16.mxu1 %v754_v15  ;;  %p895_p1 = por %p894_p0, %p893_p13 }
  0x6c   :  { %692 = vmatpush3.bf16.msra.mxu0 %v764_v26 }
  0x6d   :  { %693 = vmatprep.subr.bf16.mxu0 %v928_v24  ;;  %p896_p2 = pnand %p895_p1, %p889_p12 }
  0x6e   :  { %656 = vmatpush3.bf16.msra.mxu1 %v755_v16 }
  0x6f   :  { %657 = vmatprep.subr.bf16.mxu1 %v756_v17 }
  0x70   :  { %694 = vmatpush3.bf16.msra.mxu0 %v765_v27 }
  0x71   :  { %695 = vmatprep.subr.bf16.mxu0 %v928_v24 }
  0x72   :  { %658 = vmatpush3.bf16.msra.mxu1 %v757_v18 }
  0x73   :  { %659 = vmatprep.subr.bf16.mxu1 %v758_v19 }
  0x74   :  { %696 = vmatpush3.bf16.msra.mxu0 %v766_v28 }
  0x75   :  { %697 = vmatprep.subr.bf16.mxu0 %v928_v24 }
  0x76   :  { %660 = vmatpush3.bf16.msra.mxu1 %v759_v20 }
  0x77   :  { %661 = vmatprep.subr.bf16.mxu1 %v760_v21 }
  0x78   :  { %698 = vmatpush3.bf16.msra.mxu0 %v767_v29 }
  0x79   :  { %699 = vmatprep.subr.bf16.mxu0 %v928_v24 }
  0x7a   :  { %662 = vmatpush3.bf16.msra.mxu1 %v761_v22 }
  0x7b   :  { %707 = vmatprep.subr.bf16.mxu1 %v928_v24 }
  0x7c   :  { %700 = vmatpush3.bf16.msra.mxu0 %v768_v47 }
  0x7d   :  { %701 = vmatprep.subr.bf16.mxu0 %v928_v24 }
  0x80   :  { %702 = vmatpush3.bf16.msra.mxu0 %v769_v48 }
 0x136   :  { %v176_v37 = vpop.f32.mrb[0].mxu0 }
 0x137   :  { %v177_v38 = vadd.f32 %v176_v37, %v111_v35  ;;  %v178_v39 = vpop.f32.mrb[1].mxu0 }
 0x138   :  { %v179_v40 = vadd.f32 %v178_v39, %v115_v36  ;;  %v180_v41 = vpop.f32.mrb[2].mxu0 }
 0x139   :  { %v183_v42 = vmax.f32 %v177_v38, 0.0  ;;  %v181_v43 = vpop.f32.mrb[3].mxu0 }
 0x13a   :  { %v184_v44 = vmax.f32 %v179_v40, 0.0 }
 0x13b   :  { %v185_v46 = vpack.c.bf16 %v183_v42, %v183_v42 }
 0x13c   :  { %v186_v45 = vpack.c.bf16 %v184_v44, %v184_v44 }
 0x13e   :  { %354 = vmatprep.mubr.bf16.mxu1 %v186_v45 }
 0x13f   :  { %355 = vmatmul.mubr.bf16.vlgmr.msra.gmra.mrb[0].mxu1 %v185_v46 }
 0x140   :  { %723 = vmatprep.mubr.msk.bf16.mxu1 %vm929_vm1, %v928_v24  ;;  %708 = vmatpush3.bf16.msra.mxu1 %v770_v49 }
 0x141   :  { %709 = vmatprep.subr.bf16.mxu1 %v928_v24 }
 0x144   :  { %710 = vmatpush3.bf16.msra.mxu1 %v771_v50 }
 0x145   :  { %711 = vmatprep.subr.bf16.mxu1 %v928_v24 }
 0x148   :  { %712 = vmatpush3.bf16.msra.mxu1 %v772_v51 }
 0x149   :  { %713 = vmatprep.subr.bf16.mxu1 %v928_v24 }
 0x14c   :  { %714 = vmatpush3.bf16.msra.mxu1 %v773_v52 }
 0x14d   :  { %715 = vmatprep.subr.bf16.mxu1 %v928_v24 }
 0x150   :  { %716 = vmatpush3.bf16.msra.mxu1 %v774_v53 }
 0x151   :  { %717 = vmatprep.subr.bf16.mxu1 %v928_v24 }
 0x154   :  { %718 = vmatpush3.bf16.msra.mxu1 %v775_v54 }
 0x155   :  { %719 = vmatprep.subr.bf16.mxu1 %v928_v24 }
 0x158   :  { %720 = vmatpush3.bf16.msra.mxu1 %v776_v0 }
 0x159   :  { %721 = vmatprep.subr.bf16.mxu1 %v928_v24 }
 0x15c   :  { %722 = vmatpush3.bf16.msra.mxu1 %v777_v1 }
 0x212   :  { %v663_v55 = vpop.f32.mrb[0].mxu1 }
 0x213   :  { %v664_v57 = vpop.f32.mrb[1].mxu1 }
 0x214   :  { %v665_v58 = vadd.f32 %v664_v57, %v663_v55  ;;  %v666_v59 = vpop.f32.mrb[2].mxu1 }
 0x215   :  { %v667_v60 = vpop.f32.mrb[3].mxu1 }
 0x216   :  { %v357_v61 = vadd.f32 %v665_v58, %v612_v56 }
 0x218   :  { %v362_v62 = vmax.f32 %v357_v61, 0.0 }
 0x21a   :  { %v363_v63 = vpack.c.bf16 %v362_v62, %v362_v62 }
 0x21c   :  { %704 = vmatmul.mubr.bf16.vlgmr.msra.gmra.mrb[4].mxu0 %v363_v63 }
 0x2ef   :  { %v469_v3 = vpop.f32.mrb[4].mxu0 }
 0x2f0   :  { %v470_v4 = vadd.f32 %v629_v2, %v469_v3  ;;  %v705_v5 = vpop.f32.mrb[5].mxu0 }
 0x2f1   :  { %v472_v6 = vpop.f32.mrb[6].mxu0 }
 0x2f2   :  { %v475_v7 = vmax.f32 %v470_v4, 0.0  ;;  %v706_v8 = vpop.f32.mrb[7].mxu0 }
 0x2f4   :  { %v476_v9 = vpack.c.bf16 %v475_v7, %v475_v7 }
 0x2f6   :  { %724 = vmatmul.mubr.bf16.vlgmr.msra.gmra.mrb[4].mxu1 %v476_v9 }
 0x3c9   :  { %v582_v11 = vpop.f32.mrb[4].mxu1 }
 0x3ca   :  { %v583_v12 = vadd.f32 %v638_v10, %v582_v11  ;;  %v725_v13 = vpop.f32.mrb[5].mxu1 }
 0x3cb   :  { %v585_v14 = vpop.f32.mrb[6].mxu1 }
 0x3cc   :  { %v588_v15 = vpack.c.bf16 %v583_v12, %v583_v12  ;;  %v726_v16 = vpop.f32.mrb[7].mxu1 }
 0x3ce   :  { %589 = vst [vmem:[#allocation11] sm:$0xf] %v588_v15 }
 0x3cf   :  { %899 = shalt.err (!%p896_p2)
}
 0x3d0   :  { %s900_s8 = scalar_lea.hbm %s1101_s9, 64 }
 0x3d1   :  { %p901_p3 = scmp.ne.s32.totalorder %s1101_s9, %s900_s8  ;;  %p904_p4 = scmp.lt.u32.totalorder %s900_s8, %s1101_s9 }
 0x3d3   :  { %p906_p5 = pnand %p904_p4, %p901_p3 }
 0x3d5   :  { %909 = shalt.err (!%p906_p5)
}
 0x3d6   :  { %599 = dma.vmem_to_hbm [thread:$0]  %s597_s12, 64, %s1101_s9, [#allocation4]  }
 0x3d7   :  { %916 = dma.done.wait [#allocation4], 64  }
 0x3d8   :  { %917 = vsyncadd [#allocation4], 4294967232 }
 0x3d9   :  { %603 = vsyncpa [#allocation3], 1 }
 0x3da   :  { %604 = vsyncpa [#allocation6], 1 }
 0x3db   :  { %605 = vsyncpa [#allocation9], 1 }
 0x3dc   :  { %606 = vsyncpa [#allocation4], 1 }

</bundles_post_ra>
